<compile_context>
chip_gen: v6e
topology: v6e:2x2x1
jax: 0.10.0
libtpu: 0.0.40
codegen_flags: <defaults>
</compile_context>

<pallas_src>
import jax
import jax.numpy as jnp
from jax.experimental import pallas as pl
from jax.experimental.pallas import tpu as pltpu

C_IN, C_MID, C_OUT = 4, 12, 1
K1, K2 = 3, 5
K_FUSED = K1 + K2 - 1          # 7
HALO = 128                     # K_FUSED-1 = 6 rounded up to a full lane group (aligned windows)

MAX_N_TILE = 64                # sublane tile cap (multiple of 8); VMEM-safe on v7x's 64 MiB
MAX_L_TILE = 1024              # lane tile cap (multiple of 128); 512-2048 is the roofline plateau


def _round_up(x, m):
    return (x + m - 1) // m * m


def conv1_fused_kernel(w_ref, x_ref, o_ref):
    """One (N_t, L_t) output tile of the fused 4->1, k=7 valid conv.

    w_ref : (29,)                  f32 SMEM  [i*7 + t] = fused weight, [28] = fused bias
    x_ref : (C_IN, N_t, >=L_t+6)   f32 VMEM  halo'd, channel-major input window
    o_ref : (N_t, L_t)             f32 VMEM  lane-dense output tile
    """
    n_t, l_t = o_ref.shape
    # Bias broadcast hoisted into the accumulator init (done once per tile).
    acc = jnp.full((n_t, l_t), w_ref[C_IN * K_FUSED], jnp.float32)
    # 4x7 = 28 taps, hard-coded static trip counts.  Each tap is a ref-slice load (vld slot)
    # immediately consumed by a scalar-broadcast FMA, so only `acc` stays live across the
    # unroll -- no vreg blow-up even for 1024-lane tiles, and no XLU rotates / VALU selects.
    for i in range(C_IN):
        for t in range(K_FUSED):
            acc = acc + w_ref[i * K_FUSED + t] * x_ref[i, :, t:t + l_t]
    # Single unmasked, lane-dense store of the whole tile.
    o_ref[...] = acc


def _fuse_conv_weights(w1, b1, w2, b2):
    """Exact fusion of two stacked valid Conv1d (cross-correlation) layers."""
    # w1: (C_MID, C_IN, K1); b1: (C_MID,); w2: (C_OUT, C_MID, K2); b2: (C_OUT,)
    prod = jnp.einsum('omb,mia->obai', w2, w1)            # (C_OUT, K2, K1, C_IN)
    w_comb = jnp.zeros((C_OUT, C_IN, K_FUSED), jnp.float32)
    for a in range(K1):
        for b in range(K2):
            w_comb = w_comb.at[:, :, a + b].add(prod[:, b, a, :])
    b_comb = b2 + w2.sum(axis=2) @ b1                      # (C_OUT,)
    return w_comb, b_comb


@jax.jit
def conv1_forward(x, w1, b1, w2, b2):
    """x: (N, C_IN, L) f32.  Returns conv2(conv1(x))[:, 0] of shape (N, L - 6)."""
    N, C, L = x.shape
    assert C == C_IN and L >= K_FUSED
    L_out = L - K_FUSED + 1

    # --- glue (plain JAX, traced once): fuse the two convs, flatten params for SMEM ---
    w_comb, b_comb = _fuse_conv_weights(w1, b1, w2, b2)
    w_flat = jnp.concatenate([w_comb[0].reshape(-1), b_comb]).astype(jnp.float32)   # (29,)

    # --- tiling: N_t multiple of 8 sublanes, L_t multiple of 128 lanes ---
    n_tile = _round_up(min(N, MAX_N_TILE), 8)
    l_tile = min(_round_up(L_out, 128), MAX_L_TILE)
    n_pad = _round_up(N, n_tile)
    l_out_pad = _round_up(L_out, l_tile)
    grid = (n_pad // n_tile, l_out_pad // l_tile)
    single_l_tile = grid[1] == 1

    # Halo: exactly 6 when one L tile covers everything (block == full dim -> no (8,128)
    # divisibility issue); otherwise a full 128-lane group so the overlapping pl.Element
    # windows keep 128-aligned offsets and a 128-multiple length (≈12% extra x reads at 1024).
    halo = (K_FUSED - 1) if single_l_tile else HALO
    l_in_pad = l_out_pad + halo

    # Layout plumbing (wrapper side, not kernel compute): channel-major (C_IN, N_p, L_in_p)
    # so each x_ref[i] is a contiguous lane-dense slab; zero padding is sliced off at the end.
    xt = jnp.pad(jnp.transpose(x, (1, 0, 2)),
                 ((0, 0), (0, n_pad - N), (0, l_in_pad - L)))

    if single_l_tile:
        x_spec = pl.BlockSpec((C_IN, n_tile, l_in_pad), lambda i, j: (0, i, 0))
    else:
        x_spec = pl.BlockSpec((C_IN, n_tile, pl.Element(l_tile + halo)),
                              lambda i, j: (0, i, j * l_tile))

    out = pl.pallas_call(
        conv1_fused_kernel,
        out_shape=jax.ShapeDtypeStruct((n_pad, l_out_pad), jnp.float32),
        grid_spec=pltpu.PrefetchScalarGridSpec(
            num_scalar_prefetch=0,
            grid=grid,
            in_specs=[
                pl.BlockSpec(memory_space=pltpu.MemorySpace.SMEM),   # 29 f32 -> 128 B of SMEM
                x_spec,
            ],
            out_specs=pl.BlockSpec((n_tile, l_tile), lambda i, j: (i, j)),
        ),
        compiler_params=pltpu.CompilerParams(
            dimension_semantics=("parallel", "parallel"),   # both axes megacore-shardable
            vmem_limit_bytes=32 * 1024 * 1024,              # tiles are <3 MiB double-buffered
        ),
    )(w_flat, xt)

    return out[:N, :L_out]


def ref_forward(x, w1, b1, w2, b2):
    y = jax.lax.conv_general_dilated(
        x, w1, window_strides=(1,), padding='VALID',
        dimension_numbers=('NCH', 'OIH', 'NCH')) + b1[None, :, None]
    z = jax.lax.conv_general_dilated(
        y, w2, window_strides=(1,), padding='VALID',
        dimension_numbers=('NCH', 'OIH', 'NCH')) + b2[None, :, None]
    return z[:, 0]


if __name__ == "__main__":
    key = jax.random.PRNGKey(0)
    kx, kw1, kb1, kw2, kb2 = jax.random.split(key, 5)

    N, L = 2, 16
    x = jax.random.normal(kx, (N, C_IN, L), dtype=jnp.float32)

    # Deterministic parameter init (PyTorch-style uniform(-1/sqrt(fan_in), +...)).
    bound1 = 1.0 / (C_IN * K1) ** 0.5
    w1 = jax.random.uniform(kw1, (C_MID, C_IN, K1), jnp.float32, -bound1, bound1)
    b1 = jax.random.uniform(kb1, (C_MID,), jnp.float32, -bound1, bound1)
    bound2 = 1.0 / (C_MID * K2) ** 0.5
    w2 = jax.random.uniform(kw2, (C_OUT, C_MID, K2), jnp.float32, -bound2, bound2)
    b2 = jax.random.uniform(kb2, (C_OUT,), jnp.float32, -bound2, bound2)

    out = conv1_forward(x, w1, b1, w2, b2)
    jax.block_until_ready(out)

    ref = ref_forward(x, w1, b1, w2, b2)
    assert out.shape == (N, L - K1 - K2 + 2), out.shape
    # Fusion reassociates f32 sums -> keep a small tolerance.
    assert jnp.allclose(out, ref, atol=1e-5, rtol=1e-5), float(jnp.max(jnp.abs(out - ref)))

    print("KERNEL_OK")
</pallas_src>

<mosaic_0001>
module attributes {stable_mosaic.version = 11 : i64} {
  func.func @conv1_fused_kernel(%arg0: i32, %arg1: i32, %arg2: memref<29xf32, #tpu.memory_space<smem>>, %arg3: memref<4x8x134xf32, #tpu.memory_space<vmem>>, %arg4: memref<8x128xf32, #tpu.memory_space<vmem>>) attributes {dimension_semantics = [#tpu.dimension_semantics<parallel>, #tpu.dimension_semantics<parallel>], iteration_bounds = array<i64: 1, 1>, scalar_prefetch = 0 : i64, scratch_operands = 0 : i64, tpu.core_type = #tpu.core_type<tc>, window_params = [{transform_indices = @transform_0, window_bounds = array<i64: 29>}, {transform_indices = @transform_1, window_bounds = array<i64: 4, 8, 134>}, {transform_indices = @transform_2, window_bounds = array<i64: 8, 128>}]} {
    %c28 = arith.constant 28 : index
    %0 = memref.load %arg2[%c28] : memref<29xf32, #tpu.memory_space<smem>>
    %1 = vector.broadcast %0 : f32 to vector<8x128xf32>
    %c0 = arith.constant 0 : index
    %2 = memref.load %arg2[%c0] : memref<29xf32, #tpu.memory_space<smem>>
    %c0_0 = arith.constant 0 : index
    %c0_1 = arith.constant 0 : index
    %c0_2 = arith.constant 0 : index
    %3 = vector.load %arg3[%c0_0, %c0_1, %c0_2] : memref<4x8x134xf32, #tpu.memory_space<vmem>>, vector<1x8x128xf32>
    %4 = vector.shape_cast %3 : vector<1x8x128xf32> to vector<8x128xf32>
    %5 = vector.broadcast %2 : f32 to vector<8x128xf32>
    %6 = arith.mulf %5, %4 : vector<8x128xf32>
    %7 = arith.addf %1, %6 : vector<8x128xf32>
    %c1 = arith.constant 1 : index
    %8 = memref.load %arg2[%c1] : memref<29xf32, #tpu.memory_space<smem>>
    %c0_3 = arith.constant 0 : index
    %c0_4 = arith.constant 0 : index
    %c1_5 = arith.constant 1 : index
    %9 = vector.load %arg3[%c0_3, %c0_4, %c1_5] : memref<4x8x134xf32, #tpu.memory_space<vmem>>, vector<1x8x128xf32>
    %10 = vector.shape_cast %9 : vector<1x8x128xf32> to vector<8x128xf32>
    %11 = vector.broadcast %8 : f32 to vector<8x128xf32>
    %12 = arith.mulf %11, %10 : vector<8x128xf32>
    %13 = arith.addf %7, %12 : vector<8x128xf32>
    %c2 = arith.constant 2 : index
    %14 = memref.load %arg2[%c2] : memref<29xf32, #tpu.memory_space<smem>>
    %c0_6 = arith.constant 0 : index
    %c0_7 = arith.constant 0 : index
    %c2_8 = arith.constant 2 : index
    %15 = vector.load %arg3[%c0_6, %c0_7, %c2_8] : memref<4x8x134xf32, #tpu.memory_space<vmem>>, vector<1x8x128xf32>
    %16 = vector.shape_cast %15 : vector<1x8x128xf32> to vector<8x128xf32>
    %17 = vector.broadcast %14 : f32 to vector<8x128xf32>
    %18 = arith.mulf %17, %16 : vector<8x128xf32>
    %19 = arith.addf %13, %18 : vector<8x128xf32>
    %c3 = arith.constant 3 : index
    %20 = memref.load %arg2[%c3] : memref<29xf32, #tpu.memory_space<smem>>
    %c0_9 = arith.constant 0 : index
    %c0_10 = arith.constant 0 : index
    %c3_11 = arith.constant 3 : index
    %21 = vector.load %arg3[%c0_9, %c0_10, %c3_11] : memref<4x8x134xf32, #tpu.memory_space<vmem>>, vector<1x8x128xf32>
    %22 = vector.shape_cast %21 : vector<1x8x128xf32> to vector<8x128xf32>
    %23 = vector.broadcast %20 : f32 to vector<8x128xf32>
    %24 = arith.mulf %23, %22 : vector<8x128xf32>
    %25 = arith.addf %19, %24 : vector<8x128xf32>
    %c4 = arith.constant 4 : index
    %26 = memref.load %arg2[%c4] : memref<29xf32, #tpu.memory_space<smem>>
    %c0_12 = arith.constant 0 : index
    %c0_13 = arith.constant 0 : index
    %c4_14 = arith.constant 4 : index
    %27 = vector.load %arg3[%c0_12, %c0_13, %c4_14] : memref<4x8x134xf32, #tpu.memory_space<vmem>>, vector<1x8x128xf32>
    %28 = vector.shape_cast %27 : vector<1x8x128xf32> to vector<8x128xf32>
    %29 = vector.broadcast %26 : f32 to vector<8x128xf32>
    %30 = arith.mulf %29, %28 : vector<8x128xf32>
    %31 = arith.addf %25, %30 : vector<8x128xf32>
    %c5 = arith.constant 5 : index
    %32 = memref.load %arg2[%c5] : memref<29xf32, #tpu.memory_space<smem>>
    %c0_15 = arith.constant 0 : index
    %c0_16 = arith.constant 0 : index
    %c5_17 = arith.constant 5 : index
    %33 = vector.load %arg3[%c0_15, %c0_16, %c5_17] : memref<4x8x134xf32, #tpu.memory_space<vmem>>, vector<1x8x128xf32>
    %34 = vector.shape_cast %33 : vector<1x8x128xf32> to vector<8x128xf32>
    %35 = vector.broadcast %32 : f32 to vector<8x128xf32>
    %36 = arith.mulf %35, %34 : vector<8x128xf32>
    %37 = arith.addf %31, %36 : vector<8x128xf32>
    %c6 = arith.constant 6 : index
    %38 = memref.load %arg2[%c6] : memref<29xf32, #tpu.memory_space<smem>>
    %c0_18 = arith.constant 0 : index
    %c0_19 = arith.constant 0 : index
    %c6_20 = arith.constant 6 : index
    %39 = vector.load %arg3[%c0_18, %c0_19, %c6_20] : memref<4x8x134xf32, #tpu.memory_space<vmem>>, vector<1x8x128xf32>
    %40 = vector.shape_cast %39 : vector<1x8x128xf32> to vector<8x128xf32>
    %41 = vector.broadcast %38 : f32 to vector<8x128xf32>
    %42 = arith.mulf %41, %40 : vector<8x128xf32>
    %43 = arith.addf %37, %42 : vector<8x128xf32>
    %c7 = arith.constant 7 : index
    %44 = memref.load %arg2[%c7] : memref<29xf32, #tpu.memory_space<smem>>
    %c1_21 = arith.constant 1 : index
    %c0_22 = arith.constant 0 : index
    %c0_23 = arith.constant 0 : index
    %45 = vector.load %arg3[%c1_21, %c0_22, %c0_23] : memref<4x8x134xf32, #tpu.memory_space<vmem>>, vector<1x8x128xf32>
    %46 = vector.shape_cast %45 : vector<1x8x128xf32> to vector<8x128xf32>
    %47 = vector.broadcast %44 : f32 to vector<8x128xf32>
    %48 = arith.mulf %47, %46 : vector<8x128xf32>
    %49 = arith.addf %43, %48 : vector<8x128xf32>
    %c8 = arith.constant 8 : index
    %50 = memref.load %arg2[%c8] : memref<29xf32, #tpu.memory_space<smem>>
    %c1_24 = arith.constant 1 : index
    %c0_25 = arith.constant 0 : index
    %c1_26 = arith.constant 1 : index
    %51 = vector.load %arg3[%c1_24, %c0_25, %c1_26] : memref<4x8x134xf32, #tpu.memory_space<vmem>>, vector<1x8x128xf32>
    %52 = vector.shape_cast %51 : vector<1x8x128xf32> to vector<8x128xf32>
    %53 = vector.broadcast %50 : f32 to vector<8x128xf32>
    %54 = arith.mulf %53, %52 : vector<8x128xf32>
    %55 = arith.addf %49, %54 : vector<8x128xf32>
    %c9 = arith.constant 9 : index
    %56 = memref.load %arg2[%c9] : memref<29xf32, #tpu.memory_space<smem>>
    %c1_27 = arith.constant 1 : index
    %c0_28 = arith.constant 0 : index
    %c2_29 = arith.constant 2 : index
    %57 = vector.load %arg3[%c1_27, %c0_28, %c2_29] : memref<4x8x134xf32, #tpu.memory_space<vmem>>, vector<1x8x128xf32>
    %58 = vector.shape_cast %57 : vector<1x8x128xf32> to vector<8x128xf32>
    %59 = vector.broadcast %56 : f32 to vector<8x128xf32>
    %60 = arith.mulf %59, %58 : vector<8x128xf32>
    %61 = arith.addf %55, %60 : vector<8x128xf32>
    %c10 = arith.constant 10 : index
    %62 = memref.load %arg2[%c10] : memref<29xf32, #tpu.memory_space<smem>>
    %c1_30 = arith.constant 1 : index
    %c0_31 = arith.constant 0 : index
    %c3_32 = arith.constant 3 : index
    %63 = vector.load %arg3[%c1_30, %c0_31, %c3_32] : memref<4x8x134xf32, #tpu.memory_space<vmem>>, vector<1x8x128xf32>
    %64 = vector.shape_cast %63 : vector<1x8x128xf32> to vector<8x128xf32>
    %65 = vector.broadcast %62 : f32 to vector<8x128xf32>
    %66 = arith.mulf %65, %64 : vector<8x128xf32>
    %67 = arith.addf %61, %66 : vector<8x128xf32>
    %c11 = arith.constant 11 : index
    %68 = memref.load %arg2[%c11] : memref<29xf32, #tpu.memory_space<smem>>
    %c1_33 = arith.constant 1 : index
    %c0_34 = arith.constant 0 : index
    %c4_35 = arith.constant 4 : index
    %69 = vector.load %arg3[%c1_33, %c0_34, %c4_35] : memref<4x8x134xf32, #tpu.memory_space<vmem>>, vector<1x8x128xf32>
    %70 = vector.shape_cast %69 : vector<1x8x128xf32> to vector<8x128xf32>
    %71 = vector.broadcast %68 : f32 to vector<8x128xf32>
    %72 = arith.mulf %71, %70 : vector<8x128xf32>
    %73 = arith.addf %67, %72 : vector<8x128xf32>
    %c12 = arith.constant 12 : index
    %74 = memref.load %arg2[%c12] : memref<29xf32, #tpu.memory_space<smem>>
    %c1_36 = arith.constant 1 : index
    %c0_37 = arith.constant 0 : index
    %c5_38 = arith.constant 5 : index
    %75 = vector.load %arg3[%c1_36, %c0_37, %c5_38] : memref<4x8x134xf32, #tpu.memory_space<vmem>>, vector<1x8x128xf32>
    %76 = vector.shape_cast %75 : vector<1x8x128xf32> to vector<8x128xf32>
    %77 = vector.broadcast %74 : f32 to vector<8x128xf32>
    %78 = arith.mulf %77, %76 : vector<8x128xf32>
    %79 = arith.addf %73, %78 : vector<8x128xf32>
    %c13 = arith.constant 13 : index
    %80 = memref.load %arg2[%c13] : memref<29xf32, #tpu.memory_space<smem>>
    %c1_39 = arith.constant 1 : index
    %c0_40 = arith.constant 0 : index
    %c6_41 = arith.constant 6 : index
    %81 = vector.load %arg3[%c1_39, %c0_40, %c6_41] : memref<4x8x134xf32, #tpu.memory_space<vmem>>, vector<1x8x128xf32>
    %82 = vector.shape_cast %81 : vector<1x8x128xf32> to vector<8x128xf32>
    %83 = vector.broadcast %80 : f32 to vector<8x128xf32>
    %84 = arith.mulf %83, %82 : vector<8x128xf32>
    %85 = arith.addf %79, %84 : vector<8x128xf32>
    %c14 = arith.constant 14 : index
    %86 = memref.load %arg2[%c14] : memref<29xf32, #tpu.memory_space<smem>>
    %c2_42 = arith.constant 2 : index
    %c0_43 = arith.constant 0 : index
    %c0_44 = arith.constant 0 : index
    %87 = vector.load %arg3[%c2_42, %c0_43, %c0_44] : memref<4x8x134xf32, #tpu.memory_space<vmem>>, vector<1x8x128xf32>
    %88 = vector.shape_cast %87 : vector<1x8x128xf32> to vector<8x128xf32>
    %89 = vector.broadcast %86 : f32 to vector<8x128xf32>
    %90 = arith.mulf %89, %88 : vector<8x128xf32>
    %91 = arith.addf %85, %90 : vector<8x128xf32>
    %c15 = arith.constant 15 : index
    %92 = memref.load %arg2[%c15] : memref<29xf32, #tpu.memory_space<smem>>
    %c2_45 = arith.constant 2 : index
    %c0_46 = arith.constant 0 : index
    %c1_47 = arith.constant 1 : index
    %93 = vector.load %arg3[%c2_45, %c0_46, %c1_47] : memref<4x8x134xf32, #tpu.memory_space<vmem>>, vector<1x8x128xf32>
    %94 = vector.shape_cast %93 : vector<1x8x128xf32> to vector<8x128xf32>
    %95 = vector.broadcast %92 : f32 to vector<8x128xf32>
    %96 = arith.mulf %95, %94 : vector<8x128xf32>
    %97 = arith.addf %91, %96 : vector<8x128xf32>
    %c16 = arith.constant 16 : index
    %98 = memref.load %arg2[%c16] : memref<29xf32, #tpu.memory_space<smem>>
    %c2_48 = arith.constant 2 : index
    %c0_49 = arith.constant 0 : index
    %c2_50 = arith.constant 2 : index
    %99 = vector.load %arg3[%c2_48, %c0_49, %c2_50] : memref<4x8x134xf32, #tpu.memory_space<vmem>>, vector<1x8x128xf32>
    %100 = vector.shape_cast %99 : vector<1x8x128xf32> to vector<8x128xf32>
    %101 = vector.broadcast %98 : f32 to vector<8x128xf32>
    %102 = arith.mulf %101, %100 : vector<8x128xf32>
    %103 = arith.addf %97, %102 : vector<8x128xf32>
    %c17 = arith.constant 17 : index
    %104 = memref.load %arg2[%c17] : memref<29xf32, #tpu.memory_space<smem>>
    %c2_51 = arith.constant 2 : index
    %c0_52 = arith.constant 0 : index
    %c3_53 = arith.constant 3 : index
    %105 = vector.load %arg3[%c2_51, %c0_52, %c3_53] : memref<4x8x134xf32, #tpu.memory_space<vmem>>, vector<1x8x128xf32>
    %106 = vector.shape_cast %105 : vector<1x8x128xf32> to vector<8x128xf32>
    %107 = vector.broadcast %104 : f32 to vector<8x128xf32>
    %108 = arith.mulf %107, %106 : vector<8x128xf32>
    %109 = arith.addf %103, %108 : vector<8x128xf32>
    %c18 = arith.constant 18 : index
    %110 = memref.load %arg2[%c18] : memref<29xf32, #tpu.memory_space<smem>>
    %c2_54 = arith.constant 2 : index
    %c0_55 = arith.constant 0 : index
    %c4_56 = arith.constant 4 : index
    %111 = vector.load %arg3[%c2_54, %c0_55, %c4_56] : memref<4x8x134xf32, #tpu.memory_space<vmem>>, vector<1x8x128xf32>
    %112 = vector.shape_cast %111 : vector<1x8x128xf32> to vector<8x128xf32>
    %113 = vector.broadcast %110 : f32 to vector<8x128xf32>
    %114 = arith.mulf %113, %112 : vector<8x128xf32>
    %115 = arith.addf %109, %114 : vector<8x128xf32>
    %c19 = arith.constant 19 : index
    %116 = memref.load %arg2[%c19] : memref<29xf32, #tpu.memory_space<smem>>
    %c2_57 = arith.constant 2 : index
    %c0_58 = arith.constant 0 : index
    %c5_59 = arith.constant 5 : index
    %117 = vector.load %arg3[%c2_57, %c0_58, %c5_59] : memref<4x8x134xf32, #tpu.memory_space<vmem>>, vector<1x8x128xf32>
    %118 = vector.shape_cast %117 : vector<1x8x128xf32> to vector<8x128xf32>
    %119 = vector.broadcast %116 : f32 to vector<8x128xf32>
    %120 = arith.mulf %119, %118 : vector<8x128xf32>
    %121 = arith.addf %115, %120 : vector<8x128xf32>
    %c20 = arith.constant 20 : index
    %122 = memref.load %arg2[%c20] : memref<29xf32, #tpu.memory_space<smem>>
    %c2_60 = arith.constant 2 : index
    %c0_61 = arith.constant 0 : index
    %c6_62 = arith.constant 6 : index
    %123 = vector.load %arg3[%c2_60, %c0_61, %c6_62] : memref<4x8x134xf32, #tpu.memory_space<vmem>>, vector<1x8x128xf32>
    %124 = vector.shape_cast %123 : vector<1x8x128xf32> to vector<8x128xf32>
    %125 = vector.broadcast %122 : f32 to vector<8x128xf32>
    %126 = arith.mulf %125, %124 : vector<8x128xf32>
    %127 = arith.addf %121, %126 : vector<8x128xf32>
    %c21 = arith.constant 21 : index
    %128 = memref.load %arg2[%c21] : memref<29xf32, #tpu.memory_space<smem>>
    %c3_63 = arith.constant 3 : index
    %c0_64 = arith.constant 0 : index
    %c0_65 = arith.constant 0 : index
    %129 = vector.load %arg3[%c3_63, %c0_64, %c0_65] : memref<4x8x134xf32, #tpu.memory_space<vmem>>, vector<1x8x128xf32>
    %130 = vector.shape_cast %129 : vector<1x8x128xf32> to vector<8x128xf32>
    %131 = vector.broadcast %128 : f32 to vector<8x128xf32>
    %132 = arith.mulf %131, %130 : vector<8x128xf32>
    %133 = arith.addf %127, %132 : vector<8x128xf32>
    %c22 = arith.constant 22 : index
    %134 = memref.load %arg2[%c22] : memref<29xf32, #tpu.memory_space<smem>>
    %c3_66 = arith.constant 3 : index
    %c0_67 = arith.constant 0 : index
    %c1_68 = arith.constant 1 : index
    %135 = vector.load %arg3[%c3_66, %c0_67, %c1_68] : memref<4x8x134xf32, #tpu.memory_space<vmem>>, vector<1x8x128xf32>
    %136 = vector.shape_cast %135 : vector<1x8x128xf32> to vector<8x128xf32>
    %137 = vector.broadcast %134 : f32 to vector<8x128xf32>
    %138 = arith.mulf %137, %136 : vector<8x128xf32>
    %139 = arith.addf %133, %138 : vector<8x128xf32>
    %c23 = arith.constant 23 : index
    %140 = memref.load %arg2[%c23] : memref<29xf32, #tpu.memory_space<smem>>
    %c3_69 = arith.constant 3 : index
    %c0_70 = arith.constant 0 : index
    %c2_71 = arith.constant 2 : index
    %141 = vector.load %arg3[%c3_69, %c0_70, %c2_71] : memref<4x8x134xf32, #tpu.memory_space<vmem>>, vector<1x8x128xf32>
    %142 = vector.shape_cast %141 : vector<1x8x128xf32> to vector<8x128xf32>
    %143 = vector.broadcast %140 : f32 to vector<8x128xf32>
    %144 = arith.mulf %143, %142 : vector<8x128xf32>
    %145 = arith.addf %139, %144 : vector<8x128xf32>
    %c24 = arith.constant 24 : index
    %146 = memref.load %arg2[%c24] : memref<29xf32, #tpu.memory_space<smem>>
    %c3_72 = arith.constant 3 : index
    %c0_73 = arith.constant 0 : index
    %c3_74 = arith.constant 3 : index
    %147 = vector.load %arg3[%c3_72, %c0_73, %c3_74] : memref<4x8x134xf32, #tpu.memory_space<vmem>>, vector<1x8x128xf32>
    %148 = vector.shape_cast %147 : vector<1x8x128xf32> to vector<8x128xf32>
    %149 = vector.broadcast %146 : f32 to vector<8x128xf32>
    %150 = arith.mulf %149, %148 : vector<8x128xf32>
    %151 = arith.addf %145, %150 : vector<8x128xf32>
    %c25 = arith.constant 25 : index
    %152 = memref.load %arg2[%c25] : memref<29xf32, #tpu.memory_space<smem>>
    %c3_75 = arith.constant 3 : index
    %c0_76 = arith.constant 0 : index
    %c4_77 = arith.constant 4 : index
    %153 = vector.load %arg3[%c3_75, %c0_76, %c4_77] : memref<4x8x134xf32, #tpu.memory_space<vmem>>, vector<1x8x128xf32>
    %154 = vector.shape_cast %153 : vector<1x8x128xf32> to vector<8x128xf32>
    %155 = vector.broadcast %152 : f32 to vector<8x128xf32>
    %156 = arith.mulf %155, %154 : vector<8x128xf32>
    %157 = arith.addf %151, %156 : vector<8x128xf32>
    %c26 = arith.constant 26 : index
    %158 = memref.load %arg2[%c26] : memref<29xf32, #tpu.memory_space<smem>>
    %c3_78 = arith.constant 3 : index
    %c0_79 = arith.constant 0 : index
    %c5_80 = arith.constant 5 : index
    %159 = vector.load %arg3[%c3_78, %c0_79, %c5_80] : memref<4x8x134xf32, #tpu.memory_space<vmem>>, vector<1x8x128xf32>
    %160 = vector.shape_cast %159 : vector<1x8x128xf32> to vector<8x128xf32>
    %161 = vector.broadcast %158 : f32 to vector<8x128xf32>
    %162 = arith.mulf %161, %160 : vector<8x128xf32>
    %163 = arith.addf %157, %162 : vector<8x128xf32>
    %c27 = arith.constant 27 : index
    %164 = memref.load %arg2[%c27] : memref<29xf32, #tpu.memory_space<smem>>
    %c3_81 = arith.constant 3 : index
    %c0_82 = arith.constant 0 : index
    %c6_83 = arith.constant 6 : index
    %165 = vector.load %arg3[%c3_81, %c0_82, %c6_83] : memref<4x8x134xf32, #tpu.memory_space<vmem>>, vector<1x8x128xf32>
    %166 = vector.shape_cast %165 : vector<1x8x128xf32> to vector<8x128xf32>
    %167 = vector.broadcast %164 : f32 to vector<8x128xf32>
    %168 = arith.mulf %167, %166 : vector<8x128xf32>
    %169 = arith.addf %163, %168 : vector<8x128xf32>
    %c0_84 = arith.constant 0 : index
    %c0_85 = arith.constant 0 : index
    %170 = vector.load %arg4[%c0_84, %c0_85] : memref<8x128xf32, #tpu.memory_space<vmem>>, vector<8x128xf32>
    tpu.vector_store %arg4[%c0_84, %c0_85], %169 {strides = array<i32>} : memref<8x128xf32, #tpu.memory_space<vmem>>, vector<8x128xf32>,
    return
  }
  func.func @transform_0(%arg0: i32, %arg1: i32) -> i32 {
    %c0_i32 = arith.constant 0 : i32
    %c0_i32_0 = arith.constant 0 : i32
    return %c0_i32 : i32
  }
  func.func @transform_1(%arg0: i32, %arg1: i32) -> (i32, i32, i32) {
    %c0_i32 = arith.constant 0 : i32
    %c0_i32_0 = arith.constant 0 : i32
    %c0_i32_1 = arith.constant 0 : i32
    return %c0_i32, %arg0, %c0_i32_0 : i32, i32, i32
  }
  func.func @transform_2(%arg0: i32, %arg1: i32) -> (i32, i32) {
    %c0_i32 = arith.constant 0 : i32
    return %arg0, %arg1 : i32, i32
  }
}

</mosaic_0001>

<bundles_post_ra>
// kernel: squeeze.31
= control target key start
LH: loop header
LB: loop body
LE: loop exit
PB: predicated region body
PF: predicated region fallthrough
CT: control target
= control target key end

     0   :  { %vm8_vm0 = vcmask 56320   ;;  %s40_s8 = smov 7   ;;  %s41_s9 = smov 14   ;;  %vm14_vm1 = vcmask 228520   ;;  %vm20_vm2 = vcmask 171120   ;;  %vm26_vm3 = vcmask 113720   ;;  %s58_s0 = inlined_call_operand.vmem [shape: f32[1,4,7], index: 0, kind: input, shape index: {}]   ;;  %s59_s1 = inlined_call_operand.vmem [shape: f32[28], index: 1, kind: output, shape index: {}]  }
   0x1   :  { %v5_v0 = vld [vmem:[%s58_s0] sm:$0xf]  ;;  %s39_s0 = smov 21  }
   0x2   :  { %6 = vst [vmem:[#allocation1] sm:$0xf] %v5_v0 }
   0x9   :  { %v11_v1 = vld [vmem:[#allocation1 + $0x3] sm:$0x1]   ;;  %v23_v2 = vld [vmem:[#allocation1 + $0x1] sm:$0x1]   ;;  %v7_v3 = vld [vmem:[#allocation1] sm:$0x1]  }
   0xa   :  { %12 = vrot.lane.b32.xlu0 %v11_v1, %s39_s0  ;;  %24 = vrot.lane.b32.xlu1 %v23_v2, %s40_s8  ;;  %v17_v4 = vld [vmem:[#allocation1 + $0x2] sm:$0x1]   ;;  %9 = vst.msk [vmem:[#allocation0] sm:$0x1] %vm8_vm0, %v7_v3  }
   0xe   :  { %18 = vrot.lane.b32.xlu0 %v17_v4, %s41_s9 }
  0x7c   :  { %v13_v5 = vpop.permute.xlu0 %12   ;;  %v25_v6 = vpop.permute.xlu1 %24  }
  0x7d   :  { %15 = vst.msk [vmem:[#allocation0] sm:$0x1] %vm14_vm1, %v13_v5  }
  0x80   :  { %v19_v7 = vpop.permute.xlu0 %18  }
  0x81   :  { %21 = vst.msk [vmem:[#allocation0] sm:$0x1] %vm20_vm2, %v19_v7  }
  0x82   :  { %27 = vst.msk [vmem:[#allocation0] sm:$0x1] %vm26_vm3, %v25_v6  }
  0x89   :  { %v32_v8 = vld [vmem:[#allocation0] sm:$0x1] }
  0x8a   :  { %35 = vst [vmem:[%s59_s1] sm:$0x1] %v32_v8 }

// kernel: conv1_forward.1
= control target key start
LH: loop header
LB: loop body
LE: loop exit
PB: predicated region body
PF: predicated region fallthrough
CT: control target
= control target key end

     0   :  { %7 = vsyncpa [#allocation3], 0  ;;  %s599_s0 = inlined_call_operand.vmem [shape: f32[29], index: 0, kind: input, shape index: {}]   ;;  %s600_s1 = inlined_call_operand.vmem [shape: f32[4,8,134], index: 1, kind: input, shape index: {}]   ;;  %s601_s2 = inlined_call_operand.vmem [shape: f32[8,128], index: 2, kind: output, shape index: {}]  }
   0x1   :  { %s14_s11 = sshll.u32 %s599_s0, 4  ;;  %s15_s11 = int_to_ptr.vmem [resolvable:$true] %s14_s11 }
   0x2   :  { %s425_s12 = scalar_lea.vmem %s15_s11, 16  ;;  %p430_p1 = scmp.lt.s32.totalorder %s15_s11, %s15_s11 }
   0x3   :  { %p426_p0 = scmp.ne.s32.totalorder %s15_s11, %s425_s12  ;;  %p431_p2 = scmp.lt.s32.totalorder %s425_s12, %s425_s12 }
   0x5   :  { %p432_p3 = por %p431_p2, %p430_p1 }
   0x7   :  { %p433_p4 = pnand %p432_p3, %p426_p0 }
   0x9   :  { %436 = shalt.err (!%p433_p4)
}
   0xa   :  { %s439_s13 = smov [#allocation2]  }
   0xb   :  { %17 = dma.vmem_to_smem %s15_s11, 16, %s439_s13, [#allocation3]  }
   0xc   :  { %437 = dma.done.wait [#allocation3], 16  }
   0xd   :  { %438 = vsyncadd [#allocation3], 4294967280 }
   0xe   :  { %23 = sfence }
   0xf   :  { %s383_s14 = sld [smem:[#allocation2 + $0x2]]  ;;  %v467_v0 = vld [vmem:[%s600_s1] sm:$0xff]  ;;  %v33_v1 = vld [vmem:[%s600_s1 + $0x8] sm:$0xff]  ;;  %s440_s21 = smov 126   ;;  %v392_v20 = vld [vmem:[%s600_s1 + $0x18] sm:$0xff]  ;;  %vm43_vm0 = vcmask 1039360  }
  0x10   :  { %s382_s15 = sld [smem:[#allocation2 + $0x1]]  ;;  %s441_s22 = smov 127   ;;  %v494_v22 = vld [vmem:[%s600_s1 + $0x10] sm:$0xff]  ;;  %v402_v40 = vld [vmem:[%s600_s1 + $0x28] sm:$0xff]  ;;  %v520_v42 = vld [vmem:[%s600_s1 + $0x20] sm:$0xff]  ;;  %vm57_vm1 = vcmask 1031168  }
  0x11   :  { %s384_s16 = sld [smem:[#allocation2 + $0x3]]  ;;  %s442_s25 = smov 125   ;;  %v412_v60 = vld [vmem:[%s600_s1 + $0x38] sm:$0xff]  ;;  %v546_v62 = vld [vmem:[%s600_s1 + $0x30] sm:$0xff]  ;;  %vm71_vm2 = vcmask 1022976   ;;  %vm85_vm3 = vcmask 1014784  }
  0x12   :  { %s385_s20 = sld [smem:[#allocation2 + $0x4]]  ;;  %s443_s27 = smov 124   ;;  %vm99_vm4 = vcmask 1006592   ;;  %vm113_vm5 = vcmask 998400  }
  0x13   :  { %s386_s23 = sld [smem:[#allocation2 + $0x5]]  ;;  %s444_s29 = smov 123  }
  0x14   :  { %s387_s24 = sld [smem:[#allocation2 + $0x6]]  ;;  %s445_s7 = smov 122  }
  0x15   :  { %v48_v2 = vstv %s383_s14  ;;  %s390_s26 = sld [smem:[#allocation2 + $0x8]] }
  0x16   :  { %v49_v3 = vmul.f32 %v48_v2, %v467_v0  ;;  %v34_v4 = vstv %s382_s15  ;;  %v50_v6 = vmul.f32 %v48_v2, %v33_v1  ;;  %s393_s28 = sld [smem:[#allocation2 + $0x9]] }
  0x17   :  { %v35_v5 = vmul.f32 %v34_v4, %v467_v0  ;;  %v36_v7 = vmul.f32 %v34_v4, %v33_v1  ;;  %v62_v8 = vstv %s384_s16  ;;  %s394_s4 = sld [smem:[#allocation2 + $0xa]] }
  0x18   :  { %53 = vrot.lane.b32.xlu1 %v49_v3, %s440_s21  ;;  %v64_v9 = vmul.f32 %v62_v8, %v33_v1  ;;  %v63_v10 = vmul.f32 %v62_v8, %v467_v0  ;;  %v76_v11 = vstv %s385_s20  ;;  %s395_s8 = sld [smem:[#allocation2 + $0xb]] }
  0x19   :  { %39 = vrot.lane.b32.xlu0 %v35_v5, %s441_s22  ;;  %v78_v12 = vmul.f32 %v76_v11, %v33_v1  ;;  %v77_v13 = vmul.f32 %v76_v11, %v467_v0  ;;  %v90_v14 = vstv %s386_s23  ;;  %s396_s9 = sld [smem:[#allocation2 + $0xc]] }
  0x1a   :  { %v92_v15 = vmul.f32 %v90_v14, %v33_v1  ;;  %v91_v16 = vmul.f32 %v90_v14, %v467_v0  ;;  %v104_v17 = vstv %s387_s24  ;;  %s397_s10 = sld [smem:[#allocation2 + $0xd]] }
  0x1b   :  { %v106_v18 = vmul.f32 %v104_v17, %v33_v1  ;;  %v105_v19 = vmul.f32 %v104_v17, %v467_v0  ;;  %v126_v21 = vstv %s390_s26  ;;  %s400_s11 = sld [smem:[#allocation2 + $0xf]] }
  0x1c   :  { %55 = vrot.lane.b32.xlu1 %v50_v6, %s440_s21  ;;  %v128_v23 = vmul.f32 %v392_v20, %v126_v21  ;;  %v127_v24 = vmul.f32 %v494_v22, %v126_v21  ;;  %v139_v25 = vstv %s393_s28  ;;  %s403_s12 = sld [smem:[#allocation2 + $0x10]] }
  0x1d   :  { %41 = vrot.lane.b32.xlu0 %v36_v7, %s441_s22  ;;  %v141_v26 = vmul.f32 %v392_v20, %v139_v25  ;;  %v140_v27 = vmul.f32 %v494_v22, %v139_v25  ;;  %v152_v28 = vstv %s394_s4  ;;  %s404_s15 = sld [smem:[#allocation2 + $0x11]] }
  0x1e   :  { %v154_v29 = vmul.f32 %v392_v20, %v152_v28  ;;  %v153_v30 = vmul.f32 %v494_v22, %v152_v28  ;;  %v165_v31 = vstv %s395_s8  ;;  %s405_s18 = sld [smem:[#allocation2 + $0x12]] }
  0x1f   :  { %v167_v32 = vmul.f32 %v392_v20, %v165_v31  ;;  %v166_v33 = vmul.f32 %v494_v22, %v165_v31  ;;  %v178_v34 = vstv %s396_s9  ;;  %s406_s0 = sld [smem:[#allocation2 + $0x13]] }
  0x20   :  { %69 = vrot.lane.b32.xlu1 %v64_v9, %s442_s25  ;;  %v180_v35 = vmul.f32 %v392_v20, %v178_v34  ;;  %v179_v36 = vmul.f32 %v494_v22, %v178_v34  ;;  %v191_v37 = vstv %s397_s10  ;;  %s407_s19 = sld [smem:[#allocation2 + $0x14]] }
  0x21   :  { %67 = vrot.lane.b32.xlu0 %v63_v10, %s442_s25  ;;  %v193_v38 = vmul.f32 %v392_v20, %v191_v37  ;;  %v192_v39 = vmul.f32 %v494_v22, %v191_v37  ;;  %v212_v41 = vstv %s400_s11  ;;  %s410_s20 = sld [smem:[#allocation2 + $0x16]] }
  0x22   :  { %v214_v43 = vmul.f32 %v402_v40, %v212_v41  ;;  %v213_v44 = vmul.f32 %v520_v42, %v212_v41  ;;  %v225_v45 = vstv %s403_s12  ;;  %s413_s23 = sld [smem:[#allocation2 + $0x17]] }
  0x23   :  { %v227_v46 = vmul.f32 %v402_v40, %v225_v45  ;;  %v226_v47 = vmul.f32 %v520_v42, %v225_v45  ;;  %v238_v48 = vstv %s404_s15  ;;  %s414_s28 = sld [smem:[#allocation2 + $0x18]] }
  0x24   :  { %83 = vrot.lane.b32.xlu1 %v78_v12, %s443_s27  ;;  %v240_v49 = vmul.f32 %v402_v40, %v238_v48  ;;  %v239_v50 = vmul.f32 %v520_v42, %v238_v48  ;;  %v251_v51 = vstv %s405_s18  ;;  %s415_s4 = sld [smem:[#allocation2 + $0x19]] }
  0x25   :  { %81 = vrot.lane.b32.xlu0 %v77_v13, %s443_s27  ;;  %v253_v52 = vmul.f32 %v402_v40, %v251_v51  ;;  %v252_v53 = vmul.f32 %v520_v42, %v251_v51  ;;  %v264_v54 = vstv %s406_s0  ;;  %s416_s5 = sld [smem:[#allocation2 + $0x1a]] }
  0x26   :  { %v266_v55 = vmul.f32 %v402_v40, %v264_v54  ;;  %v265_v56 = vmul.f32 %v520_v42, %v264_v54  ;;  %v277_v57 = vstv %s407_s19  ;;  %s417_s1 = sld [smem:[#allocation2 + $0x1b]] }
  0x27   :  { %v279_v58 = vmul.f32 %v402_v40, %v277_v57  ;;  %v278_v59 = vmul.f32 %v520_v42, %v277_v57  ;;  %v298_v61 = vstv %s410_s20 }
  0x28   :  { %97 = vrot.lane.b32.xlu1 %v92_v15, %s444_s29  ;;  %v300_v63 = vmul.f32 %v412_v60, %v298_v61  ;;  %v299_v1 = vmul.f32 %v546_v62, %v298_v61  ;;  %v311_v2 = vstv %s413_s23 }
  0x29   :  { %95 = vrot.lane.b32.xlu0 %v91_v16, %s444_s29  ;;  %v313_v3 = vmul.f32 %v412_v60, %v311_v2  ;;  %v312_v4 = vmul.f32 %v546_v62, %v311_v2  ;;  %v324_v5 = vstv %s414_s28 }
  0x2a   :  { %v326_v6 = vmul.f32 %v412_v60, %v324_v5  ;;  %v325_v7 = vmul.f32 %v546_v62, %v324_v5  ;;  %v337_v8 = vstv %s415_s4 }
  0x2b   :  { %v339_v9 = vmul.f32 %v412_v60, %v337_v8  ;;  %v338_v10 = vmul.f32 %v546_v62, %v337_v8  ;;  %v350_v11 = vstv %s416_s5 }
  0x2c   :  { %111 = vrot.lane.b32.xlu1 %v106_v18, %s445_s7  ;;  %v352_v12 = vmul.f32 %v412_v60, %v350_v11  ;;  %v351_v13 = vmul.f32 %v546_v62, %v350_v11  ;;  %v363_v14 = vstv %s417_s1 }
  0x2d   :  { %109 = vrot.lane.b32.xlu0 %v105_v19, %s445_s7  ;;  %v365_v15 = vmul.f32 %v412_v60, %v363_v14  ;;  %v364_v16 = vmul.f32 %v546_v62, %v363_v14 }
  0x30   :  { %133 = vrot.lane.b32.xlu1 %v128_v23, %s441_s22 }
  0x31   :  { %131 = vrot.lane.b32.xlu0 %v127_v24, %s441_s22 }
  0x34   :  { %146 = vrot.lane.b32.xlu1 %v141_v26, %s440_s21 }
  0x35   :  { %144 = vrot.lane.b32.xlu0 %v140_v27, %s440_s21 }
  0x38   :  { %159 = vrot.lane.b32.xlu1 %v154_v29, %s442_s25 }
  0x39   :  { %157 = vrot.lane.b32.xlu0 %v153_v30, %s442_s25 }
  0x3c   :  { %172 = vrot.lane.b32.xlu1 %v167_v32, %s443_s27 }
  0x3d   :  { %170 = vrot.lane.b32.xlu0 %v166_v33, %s443_s27 }
  0x40   :  { %185 = vrot.lane.b32.xlu1 %v180_v35, %s444_s29 }
  0x41   :  { %183 = vrot.lane.b32.xlu0 %v179_v36, %s444_s29 }
  0x44   :  { %198 = vrot.lane.b32.xlu1 %v193_v38, %s445_s7 }
  0x45   :  { %196 = vrot.lane.b32.xlu0 %v192_v39, %s445_s7 }
  0x48   :  { %219 = vrot.lane.b32.xlu1 %v214_v43, %s441_s22 }
  0x49   :  { %217 = vrot.lane.b32.xlu0 %v213_v44, %s441_s22 }
  0x4c   :  { %232 = vrot.lane.b32.xlu1 %v227_v46, %s440_s21 }
  0x4d   :  { %230 = vrot.lane.b32.xlu0 %v226_v47, %s440_s21 }
  0x50   :  { %245 = vrot.lane.b32.xlu1 %v240_v49, %s442_s25 }
  0x51   :  { %243 = vrot.lane.b32.xlu0 %v239_v50, %s442_s25 }
  0x54   :  { %258 = vrot.lane.b32.xlu1 %v253_v52, %s443_s27 }
  0x55   :  { %256 = vrot.lane.b32.xlu0 %v252_v53, %s443_s27 }
  0x58   :  { %271 = vrot.lane.b32.xlu1 %v266_v55, %s444_s29 }
  0x59   :  { %269 = vrot.lane.b32.xlu0 %v265_v56, %s444_s29 }
  0x5c   :  { %284 = vrot.lane.b32.xlu1 %v279_v58, %s445_s7 }
  0x5d   :  { %282 = vrot.lane.b32.xlu0 %v278_v59, %s445_s7 }
  0x60   :  { %305 = vrot.lane.b32.xlu1 %v300_v63, %s441_s22 }
  0x61   :  { %303 = vrot.lane.b32.xlu0 %v299_v1, %s441_s22  ;;  %s381_s22 = sld [smem:[#allocation2 + $0x1c]] }
  0x64   :  { %318 = vrot.lane.b32.xlu1 %v313_v3, %s440_s21 }
  0x65   :  { %316 = vrot.lane.b32.xlu0 %v312_v4, %s440_s21  ;;  %s26_s21 = sld [smem:[#allocation2]] }
  0x67   :  { %v25_v21 = vstv %s381_s22 }
  0x68   :  { %331 = vrot.lane.b32.xlu1 %v326_v6, %s442_s25 }
  0x69   :  { %329 = vrot.lane.b32.xlu0 %v325_v7, %s442_s25  ;;  %s388_s25 = sld [smem:[#allocation2 + $0x7]] }
  0x6b   :  { %v28_v17 = vstv %s26_s21 }
  0x6c   :  { %344 = vrot.lane.b32.xlu1 %v339_v9, %s443_s27  ;;  %v29_v20 = vmul.f32 %v467_v0, %v28_v17 }
  0x6d   :  { %342 = vrot.lane.b32.xlu0 %v338_v10, %s443_s27  ;;  %s398_s27 = sld [smem:[#allocation2 + $0xe]] }
  0x6e   :  { %v30_v25 = vadd.f32 %v29_v20, %v25_v21 }
  0x6f   :  { %v120_v39 = vstv %s388_s25 }
  0x70   :  { %357 = vrot.lane.b32.xlu1 %v352_v12, %s444_s29  ;;  %v121_v45 = vmul.f32 %v494_v22, %v120_v39 }
  0x71   :  { %355 = vrot.lane.b32.xlu0 %v351_v13, %s444_s29  ;;  %s408_s29 = sld [smem:[#allocation2 + $0x15]] }
  0x73   :  { %v206_v4 = vstv %s398_s27 }
  0x74   :  { %370 = vrot.lane.b32.xlu1 %v365_v15, %s445_s7  ;;  %v207_v9 = vmul.f32 %v520_v42, %v206_v4 }
  0x75   :  { %368 = vrot.lane.b32.xlu0 %v364_v16, %s445_s7 }
  0x8a   :  { %v54_v18 = vpop.permute.xlu1 %53 }
  0x8b   :  { %v40_v19 = vpop.permute.xlu0 %39 }
  0x8e   :  { %v56_v23 = vpop.permute.xlu1 %55 }
  0x8f   :  { %v42_v24 = vpop.permute.xlu0 %41  ;;  %v58_v30 = vsel %vm57_vm1, %v54_v18, %v56_v23 }
  0x90   :  { %v44_v26 = vsel %vm43_vm0, %v40_v19, %v42_v24 }
  0x91   :  { %v46_v28 = vadd.f32 %v44_v26, %v30_v25 }
  0x92   :  { %v70_v27 = vpop.permute.xlu1 %69 }
  0x93   :  { %v68_v29 = vpop.permute.xlu0 %67  ;;  %v60_v32 = vadd.f32 %v58_v30, %v46_v28 }
  0x94   :  { %v72_v0 = vsel %vm71_vm2, %v68_v29, %v70_v27 }
  0x95   :  { %v74_v36 = vadd.f32 %v72_v0, %v60_v32 }
  0x96   :  { %v84_v31 = vpop.permute.xlu1 %83 }
  0x97   :  { %v82_v33 = vpop.permute.xlu0 %81 }
  0x98   :  { %v86_v34 = vsel %vm85_vm3, %v82_v33, %v84_v31  ;;  %v292_v31 = vstv %s408_s29 }
  0x99   :  { %v88_v40 = vadd.f32 %v86_v34, %v74_v36 }
  0x9a   :  { %v98_v35 = vpop.permute.xlu1 %97 }
  0x9b   :  { %v96_v37 = vpop.permute.xlu0 %95 }
  0x9c   :  { %v100_v38 = vsel %vm99_vm4, %v96_v37, %v98_v35  ;;  %v293_v35 = vmul.f32 %v546_v62, %v292_v31 }
  0x9d   :  { %v102_v43 = vadd.f32 %v100_v38, %v88_v40 }
  0x9e   :  { %v112_v41 = vpop.permute.xlu1 %111 }
  0x9f   :  { %v110_v44 = vpop.permute.xlu0 %109 }
  0xa0   :  { %v114_v46 = vsel %vm113_vm5, %v110_v44, %v112_v41 }
  0xa1   :  { %v116_v47 = vadd.f32 %v114_v46, %v102_v43 }
  0xa2   :  { %v134_v48 = vpop.permute.xlu1 %133 }
  0xa3   :  { %v132_v49 = vpop.permute.xlu0 %131  ;;  %v122_v50 = vadd.f32 %v121_v45, %v116_v47 }
  0xa4   :  { %v135_v55 = vsel %vm43_vm0, %v132_v49, %v134_v48 }
  0xa5   :  { %v137_v58 = vadd.f32 %v135_v55, %v122_v50 }
  0xa6   :  { %v147_v51 = vpop.permute.xlu1 %146 }
  0xa7   :  { %v145_v52 = vpop.permute.xlu0 %144 }
  0xa8   :  { %v148_v56 = vsel %vm57_vm1, %v145_v52, %v147_v51 }
  0xa9   :  { %v150_v60 = vadd.f32 %v148_v56, %v137_v58 }
  0xaa   :  { %v160_v53 = vpop.permute.xlu1 %159 }
  0xab   :  { %v158_v54 = vpop.permute.xlu0 %157 }
  0xac   :  { %v161_v22 = vsel %vm71_vm2, %v158_v54, %v160_v53 }
  0xad   :  { %v163_v1 = vadd.f32 %v161_v22, %v150_v60 }
  0xae   :  { %v173_v57 = vpop.permute.xlu1 %172 }
  0xaf   :  { %v171_v59 = vpop.permute.xlu0 %170 }
  0xb0   :  { %v174_v61 = vsel %vm85_vm3, %v171_v59, %v173_v57 }
  0xb1   :  { %v176_v5 = vadd.f32 %v174_v61, %v163_v1 }
  0xb2   :  { %v186_v63 = vpop.permute.xlu1 %185 }
  0xb3   :  { %v184_v2 = vpop.permute.xlu0 %183 }
  0xb4   :  { %v187_v3 = vsel %vm99_vm4, %v184_v2, %v186_v63 }
  0xb5   :  { %v189_v7 = vadd.f32 %v187_v3, %v176_v5 }
  0xb6   :  { %v199_v6 = vpop.permute.xlu1 %198 }
  0xb7   :  { %v197_v8 = vpop.permute.xlu0 %196 }
  0xb8   :  { %v200_v10 = vsel %vm113_vm5, %v197_v8, %v199_v6 }
  0xb9   :  { %v202_v11 = vadd.f32 %v200_v10, %v189_v7 }
  0xba   :  { %v220_v12 = vpop.permute.xlu1 %219 }
  0xbb   :  { %v218_v13 = vpop.permute.xlu0 %217  ;;  %v208_v14 = vadd.f32 %v207_v9, %v202_v11 }
  0xbc   :  { %v221_v19 = vsel %vm43_vm0, %v218_v13, %v220_v12 }
  0xbd   :  { %v223_v23 = vadd.f32 %v221_v19, %v208_v14 }
  0xbe   :  { %v233_v15 = vpop.permute.xlu1 %232 }
  0xbf   :  { %v231_v16 = vpop.permute.xlu0 %230 }
  0xc0   :  { %v234_v20 = vsel %vm57_vm1, %v231_v16, %v233_v15 }
  0xc1   :  { %v236_v25 = vadd.f32 %v234_v20, %v223_v23 }
  0xc2   :  { %v246_v17 = vpop.permute.xlu1 %245 }
  0xc3   :  { %v244_v18 = vpop.permute.xlu0 %243 }
  0xc4   :  { %v247_v42 = vsel %vm71_vm2, %v244_v18, %v246_v17 }
  0xc5   :  { %v249_v28 = vadd.f32 %v247_v42, %v236_v25 }
  0xc6   :  { %v259_v21 = vpop.permute.xlu1 %258 }
  0xc7   :  { %v257_v24 = vpop.permute.xlu0 %256 }
  0xc8   :  { %v260_v26 = vsel %vm85_vm3, %v257_v24, %v259_v21 }
  0xc9   :  { %v262_v32 = vadd.f32 %v260_v26, %v249_v28 }
  0xca   :  { %v272_v27 = vpop.permute.xlu1 %271 }
  0xcb   :  { %v270_v29 = vpop.permute.xlu0 %269 }
  0xcc   :  { %v273_v30 = vsel %vm99_vm4, %v270_v29, %v272_v27 }
  0xcd   :  { %v275_v0 = vadd.f32 %v273_v30, %v262_v32 }
  0xce   :  { %v285_v33 = vpop.permute.xlu1 %284 }
  0xcf   :  { %v283_v34 = vpop.permute.xlu0 %282 }
  0xd0   :  { %v286_v36 = vsel %vm113_vm5, %v283_v34, %v285_v33 }
  0xd1   :  { %v288_v37 = vadd.f32 %v286_v36, %v275_v0 }
  0xd2   :  { %v306_v38 = vpop.permute.xlu1 %305 }
  0xd3   :  { %v304_v39 = vpop.permute.xlu0 %303  ;;  %v294_v40 = vadd.f32 %v293_v35, %v288_v37 }
  0xd4   :  { %v307_v46 = vsel %vm43_vm0, %v304_v39, %v306_v38 }
  0xd5   :  { %v309_v49 = vadd.f32 %v307_v46, %v294_v40 }
  0xd6   :  { %v319_v41 = vpop.permute.xlu1 %318 }
  0xd7   :  { %v317_v43 = vpop.permute.xlu0 %316 }
  0xd8   :  { %v320_v47 = vsel %vm57_vm1, %v317_v43, %v319_v41 }
  0xd9   :  { %v322_v62 = vadd.f32 %v320_v47, %v309_v49 }
  0xda   :  { %v332_v44 = vpop.permute.xlu1 %331 }
  0xdb   :  { %v330_v45 = vpop.permute.xlu0 %329 }
  0xdc   :  { %v333_v51 = vsel %vm71_vm2, %v330_v45, %v332_v44 }
  0xdd   :  { %v335_v54 = vadd.f32 %v333_v51, %v322_v62 }
  0xde   :  { %v345_v48 = vpop.permute.xlu1 %344 }
  0xdf   :  { %v343_v50 = vpop.permute.xlu0 %342 }
  0xe0   :  { %v346_v52 = vsel %vm85_vm3, %v343_v50, %v345_v48 }
  0xe1   :  { %v348_v57 = vadd.f32 %v346_v52, %v335_v54 }
  0xe2   :  { %v358_v53 = vpop.permute.xlu1 %357 }
  0xe3   :  { %v356_v55 = vpop.permute.xlu0 %355 }
  0xe4   :  { %v359_v56 = vsel %vm99_vm4, %v356_v55, %v358_v53 }
  0xe5   :  { %v361_v59 = vadd.f32 %v359_v56, %v348_v57 }
  0xe6   :  { %v371_v58 = vpop.permute.xlu1 %370 }
  0xe7   :  { %v369_v22 = vpop.permute.xlu0 %368 }
  0xe8   :  { %v372_v60 = vsel %vm113_vm5, %v369_v22, %v371_v58 }
  0xe9   :  { %v374_v61 = vadd.f32 %v372_v60, %v361_v59 }
  0xeb   :  { %375 = vst [vmem:[%s601_s2] sm:$0xff] %v374_v61 }
  0xec   :  { %380 = vsyncpa [#allocation3], 1 }

</bundles_post_ra>
